<compile_context>
chip_gen: v5e
topology: v5e:2x2
jax: 0.10.0
libtpu: 0.0.40
codegen_flags: <defaults>
</compile_context>

<pallas_src>
import jax
import jax.numpy as jnp
from jax.experimental import pallas as pl
from jax.experimental.pallas import tpu as pltpu  # noqa: F401  (TPU backend)


def _identity_kernel(x_ref, o_ref):
    # o_ref aliases x_ref's HBM buffer (input_output_aliases={0: 0}), so the
    # output already contains the input data. No loads, stores, or DMAs.
    del x_ref, o_ref


def identity(x: jax.Array) -> jax.Array:
    """Pallas Identity: forward(input) = input, with zero data movement.

    Works for any shape/dtype (original NCHW layout is passed through as-is).
    """
    return pl.pallas_call(
        _identity_kernel,
        out_shape=jax.ShapeDtypeStruct(x.shape, x.dtype),
        # Keep both operands in HBM: no automatic HBM<->VMEM tile pipeline.
        in_specs=[pl.BlockSpec(memory_space=pl.ANY)],
        out_specs=pl.BlockSpec(memory_space=pl.ANY),
        # Output 0 reuses input 0's buffer -> the identity is (near-)free.
        input_output_aliases={0: 0},
    )(x)


if __name__ == "__main__":
    key = jax.random.PRNGKey(0)
    # Small NCHW input consistent with an EfficientNet feature map.
    x = jax.random.normal(key, (2, 4, 16, 16), dtype=jnp.float32)

    y = jax.block_until_ready(identity(x))

    assert y.shape == x.shape, (y.shape, x.shape)
    assert y.dtype == x.dtype, (y.dtype, x.dtype)
    assert bool(jnp.all(y == x)), "Identity kernel output mismatch"

    print("KERNEL_OK")
</pallas_src>

<mosaic_0001>
module attributes {stable_mosaic.version = 11 : i64} {
  func.func @_identity_kernel(%arg0: memref<2x4x16x16xf32, #tpu.memory_space<any>>, %arg1: memref<2x4x16x16xf32, #tpu.memory_space<any>>) attributes {dimension_semantics = [], scalar_prefetch = 0 : i64, scratch_operands = 0 : i64, tpu.core_type = #tpu.core_type<tc>} {
    return
  }
}

</mosaic_0001>

<bundles_post_ra>
// kernel: tpu_custom_call.1
= control target key start
LH: loop header
LB: loop body
LE: loop exit
PB: predicated region body
PF: predicated region fallthrough
CT: control target
= control target key end

     0   :  { %s16_s0 = inlined_call_operand.hbm [shape: f32[2,4,16,16], index: 0, kind: input, shape index: {}, may-alias: {0,1}]   ;;  %s17_s1 = inlined_call_operand.hbm [shape: f32[2,4,16,16], index: 1, kind: output, shape index: {}, may-alias: {0,1}]  }

</bundles_post_ra>
